<compile_context>
chip_gen: v5e
topology: v5e:2x2
jax: 0.10.0
libtpu: 0.0.40
codegen_flags: <defaults>
</compile_context>

<pallas_src>
import functools

import jax
import jax.numpy as jnp
from jax.experimental import pallas as pl
from jax.experimental.pallas import tpu as pltpu


def _survifmle_kernel(inc_ref, t_ref, e_ref, out_ref, *, alpha, eps, reduction,
                      batch, tb):
    inc = inc_ref[...].astype(jnp.float32)          # [TB, T]  (per-tile up-cast)
    t = t_ref[...]                                  # [TB, 1]  int32
    e = e_ref[...].astype(jnp.float32)              # [TB, 1]
    TB, T = inc.shape

    cols = jax.lax.broadcasted_iota(jnp.int32, (TB, T), 1)
    le_mask = cols <= t                             # [TB, T] bool
    eq_mask = cols == t                             # [TB, T] bool
    # gather(incidence, t)  and  gather(cumsum(incidence), t)  as masked row sums.
    zero = jnp.zeros_like(inc)
    inc_at_t = jnp.sum(jnp.where(eq_mask, inc, zero), axis=1, keepdims=True)
    cif_at_t = jnp.sum(jnp.where(le_mask, inc, zero), axis=1, keepdims=True)

    # c = 1 - e  (censoring indicator); uncensored term weighted by e, censored by c.
    uncensored_loss = -e * jnp.log(jnp.maximum(inc_at_t, eps))
    censored_loss = -(1.0 - e) * jnp.log(jnp.maximum(1.0 - cif_at_t, eps))
    neg_l = censored_loss + uncensored_loss
    loss = (1.0 - alpha) * neg_l + alpha * uncensored_loss        # [TB, 1] f32

    if reduction == "none":
        # OOB rows of the tail block are dropped by Pallas on writeback.
        out_ref[...] = loss
    else:
        # Mask rows beyond the true batch size (tail block) before reducing.
        rows = pl.program_id(0) * tb + jax.lax.broadcasted_iota(
            jnp.int32, (TB, 1), 0)
        loss = jnp.where(rows < batch, loss, 0.0)
        # Broadcast the scalar partial sum into a full (8,128) tile -> unmasked vst.
        out_ref[...] = jnp.broadcast_to(jnp.sum(loss), out_ref.shape)


def _choose_block_rows(B, T, itemsize, vmem_budget_bytes=8 * 1024 * 1024):
    """Pick a batch tile (multiple of 8) whose double-buffered tiles fit the budget."""
    t_lanes = max(pl.cdiv(T, 128) * 128, 128)          # lane padding of the time axis
    # incidence tile + t/e tiles (each lane-padded to 128 lanes of i32/f32),
    # double-buffered by the Pallas pipeline.
    per_row = 2 * (t_lanes * itemsize + 2 * 128 * 4)
    tb = vmem_budget_bytes // per_row
    tb = max(8, min(2048, (tb // 8) * 8))
    tb = min(tb, pl.cdiv(B, 8) * 8)                    # never bigger than the batch
    return int(tb)


def surv_ifmle_loss(incidence_hat, t, e, *, alpha=0.0, eps=1e-7,
                    reduction="mean", cur_alpha=None, block_rows=None):
    """JAX/Pallas equivalent of SurvIFMLE.forward.

    incidence_hat: [B, MAX_T] float (f32 or bf16), already softmax'd.
    t:             [B] or [B, 1] integer discrete-time labels.
    e:             [B] or [B, 1] event indicators (1 = uncensored).
    """
    assert reduction in ("sum", "mean", "none")
    B, T = incidence_hat.shape
    a = float(alpha if cur_alpha is None else cur_alpha)

    t2 = jnp.reshape(t, (B, 1)).astype(jnp.int32)
    e2 = jnp.reshape(e, (B, 1)).astype(jnp.float32)

    itemsize = jnp.dtype(incidence_hat.dtype).itemsize
    tb = _choose_block_rows(B, T, itemsize) if block_rows is None else int(block_rows)
    assert tb % 8 == 0, "block_rows must be a multiple of 8"
    nb = pl.cdiv(B, tb)

    kernel = functools.partial(_survifmle_kernel, alpha=a, eps=float(eps),
                               reduction=reduction, batch=B, tb=tb)

    in_specs = [
        pl.BlockSpec((tb, T), lambda i: (i, 0)),   # incidence tile (time axis whole)
        pl.BlockSpec((tb, 1), lambda i: (i, 0)),   # t
        pl.BlockSpec((tb, 1), lambda i: (i, 0)),   # e
    ]
    if reduction == "none":
        out_shape = jax.ShapeDtypeStruct((B, 1), jnp.float32)
        out_spec = pl.BlockSpec((tb, 1), lambda i: (i, 0))
    else:
        # One lane-aligned (8,128) tile of partial sums per batch block; the batch
        # grid axis stays 'parallel' (no serialized accumulator).
        out_shape = jax.ShapeDtypeStruct((nb, 8, 128), jnp.float32)
        out_spec = pl.BlockSpec((1, 8, 128), lambda i: (i, 0, 0))

    out = pl.pallas_call(
        kernel,
        out_shape=out_shape,
        grid=(nb,),
        in_specs=in_specs,
        out_specs=out_spec,
        compiler_params=pltpu.CompilerParams(
            dimension_semantics=("parallel",)),
    )(incidence_hat, t2, e2)

    if reduction == "none":
        return out                          # [B, 1], matches torch per-sample output
    total = jnp.sum(out[:, 0, 0])           # tiny final reduction in XLA
    if reduction == "mean":
        return total / B                    # divide by the true batch size
    return total


def _reference(incidence_hat, t, e, alpha=0.0, eps=1e-7, reduction="mean"):
    B = incidence_hat.shape[0]
    t = jnp.reshape(t, (B, 1)).astype(jnp.int32)
    c = 1.0 - jnp.reshape(e, (B, 1)).astype(jnp.float32)
    cif = jnp.cumsum(incidence_hat, axis=1)
    g_inc = jnp.take_along_axis(incidence_hat, t, axis=1)
    g_cif = jnp.take_along_axis(cif, t, axis=1)
    unc = -(1.0 - c) * jnp.log(jnp.clip(g_inc, eps, None))
    cen = -c * jnp.log(jnp.clip(1.0 - g_cif, eps, None))
    loss = (1.0 - alpha) * (cen + unc) + alpha * unc
    if reduction == "mean":
        return jnp.mean(loss)
    if reduction == "sum":
        return jnp.sum(loss)
    return loss


if __name__ == "__main__":
    key = jax.random.PRNGKey(0)
    k1, k2, k3 = jax.random.split(key, 3)

    B, MAX_T = 37, 24
    logits = jax.random.normal(k1, (B, MAX_T), dtype=jnp.float32)
    incidence_hat = jax.nn.softmax(logits, axis=1)            # [B, MAX_T], softmax'd
    # keep t away from the terminal bin so 1 - CIF is not at the eps-clamp boundary
    t = jax.random.randint(k2, (B,), 0, MAX_T - 2, dtype=jnp.int32)
    e = jax.random.bernoulli(k3, 0.6, (B,)).astype(jnp.float32)

    # Multi-block path: block_rows=16 -> grid of 3 with a partial (masked) tail block.
    for red in ("mean", "sum", "none"):
        out = surv_ifmle_loss(incidence_hat, t, e, alpha=0.3, reduction=red,
                              block_rows=16)
        out = jax.block_until_ready(out)
        ref = _reference(incidence_hat, t, e, alpha=0.3, reduction=red)
        assert jnp.allclose(out, ref, rtol=1e-4, atol=1e-5), (red, out, ref)
        if red == "none":
            assert out.shape == (B, 1)

    # cur_alpha override path (matches torch's forward(cur_alpha=...)).
    out = surv_ifmle_loss(incidence_hat, t, e, alpha=0.3, cur_alpha=0.7,
                          reduction="mean", block_rows=16)
    out = jax.block_until_ready(out)
    ref = _reference(incidence_hat, t, e, alpha=0.7, reduction="mean")
    assert jnp.allclose(out, ref, rtol=1e-4, atol=1e-5), (out, ref)

    # Auto tile-size path + native bf16 ingest (up-cast happens per tile in VMEM).
    inc_bf16 = incidence_hat.astype(jnp.bfloat16)
    out = surv_ifmle_loss(inc_bf16, t, e, alpha=0.0, reduction="mean")
    out = jax.block_until_ready(out)
    ref = _reference(inc_bf16.astype(jnp.float32), t, e, alpha=0.0, reduction="mean")
    assert jnp.allclose(out, ref, rtol=1e-4, atol=1e-5), (out, ref)

    print("KERNEL_OK")
</pallas_src>

<mosaic_0001>
module attributes {stable_mosaic.version = 11 : i64} {
  func.func @_survifmle_kernel(%arg0: i32, %arg1: memref<16x24xf32, #tpu.memory_space<vmem>>, %arg2: memref<16x1xi32, #tpu.memory_space<vmem>>, %arg3: memref<16x1xf32, #tpu.memory_space<vmem>>, %arg4: memref<1x8x128xf32, #tpu.memory_space<vmem>>) attributes {dimension_semantics = [#tpu.dimension_semantics<parallel>], iteration_bounds = array<i64: 3>, scalar_prefetch = 0 : i64, scratch_operands = 0 : i64, tpu.core_type = #tpu.core_type<tc>, window_params = [{transform_indices = @transform_0, window_bounds = array<i64: 16, 24>}, {transform_indices = @transform_1, window_bounds = array<i64: 16, 1>}, {transform_indices = @transform_2, window_bounds = array<i64: 16, 1>}, {transform_indices = @transform_3, window_bounds = array<i64: 1, 8, 128>}]} {
    %c0 = arith.constant 0 : index
    %c0_0 = arith.constant 0 : index
    %0 = vector.load %arg1[%c0, %c0_0] : memref<16x24xf32, #tpu.memory_space<vmem>>, vector<16x24xf32>
    %c0_1 = arith.constant 0 : index
    %c0_2 = arith.constant 0 : index
    %1 = vector.load %arg2[%c0_1, %c0_2] : memref<16x1xi32, #tpu.memory_space<vmem>>, vector<16x1xi32>
    %c0_3 = arith.constant 0 : index
    %c0_4 = arith.constant 0 : index
    %2 = vector.load %arg3[%c0_3, %c0_4] : memref<16x1xf32, #tpu.memory_space<vmem>>, vector<16x1xf32>
    %3 = tpu.iota {dimensions = array<i32: 1>} : vector<16x24xi32>
    %4 = vector.broadcast %1 : vector<16x1xi32> to vector<16x24xi32>
    %5 = arith.cmpi sle, %3, %4 : vector<16x24xi32>
    %6 = vector.broadcast %1 : vector<16x1xi32> to vector<16x24xi32>
    %7 = arith.cmpi eq, %3, %6 : vector<16x24xi32>
    %cst = arith.constant 0.000000e+00 : f32
    %8 = vector.broadcast %cst : f32 to vector<16x24xf32>
    %9 = arith.select %7, %0, %8 : vector<16x24xi1>, vector<16x24xf32>
    %cst_5 = arith.constant dense<0.000000e+00> : vector<16xf32>
    %10 = vector.multi_reduction <add>, %9, %cst_5 [1] : vector<16x24xf32> to vector<16xf32>
    %11 = vector.shape_cast %10 : vector<16xf32> to vector<16x1xf32>
    %12 = arith.select %5, %0, %8 : vector<16x24xi1>, vector<16x24xf32>
    %cst_6 = arith.constant dense<0.000000e+00> : vector<16xf32>
    %13 = vector.multi_reduction <add>, %12, %cst_6 [1] : vector<16x24xf32> to vector<16xf32>
    %14 = vector.shape_cast %13 : vector<16xf32> to vector<16x1xf32>
    %cst_7 = arith.constant 0.000000e+00 : f32
    %15 = vector.broadcast %cst_7 : f32 to vector<16x1xf32>
    %16 = arith.subf %15, %2 : vector<16x1xf32>
    %cst_8 = arith.constant 1.000000e-07 : f32
    %17 = vector.broadcast %cst_8 : f32 to vector<16x1xf32>
    %18 = arith.maximumf %11, %17 : vector<16x1xf32>
    %19 = math.log %18 : vector<16x1xf32>
    %20 = arith.mulf %16, %19 : vector<16x1xf32>
    %cst_9 = arith.constant 1.000000e+00 : f32
    %21 = vector.broadcast %cst_9 : f32 to vector<16x1xf32>
    %22 = arith.subf %21, %2 : vector<16x1xf32>
    %cst_10 = arith.constant 0.000000e+00 : f32
    %23 = vector.broadcast %cst_10 : f32 to vector<16x1xf32>
    %24 = arith.subf %23, %22 : vector<16x1xf32>
    %cst_11 = arith.constant 1.000000e+00 : f32
    %25 = vector.broadcast %cst_11 : f32 to vector<16x1xf32>
    %26 = arith.subf %25, %14 : vector<16x1xf32>
    %cst_12 = arith.constant 1.000000e-07 : f32
    %27 = vector.broadcast %cst_12 : f32 to vector<16x1xf32>
    %28 = arith.maximumf %26, %27 : vector<16x1xf32>
    %29 = math.log %28 : vector<16x1xf32>
    %30 = arith.mulf %24, %29 : vector<16x1xf32>
    %31 = arith.addf %30, %20 : vector<16x1xf32>
    %cst_13 = arith.constant 0.699999988 : f32
    %32 = vector.broadcast %cst_13 : f32 to vector<16x1xf32>
    %33 = arith.mulf %32, %31 : vector<16x1xf32>
    %cst_14 = arith.constant 3.000000e-01 : f32
    %34 = vector.broadcast %cst_14 : f32 to vector<16x1xf32>
    %35 = arith.mulf %34, %20 : vector<16x1xf32>
    %36 = arith.addf %33, %35 : vector<16x1xf32>
    %c16_i32 = arith.constant 16 : i32
    %37 = arith.muli %arg0, %c16_i32 : i32
    %38 = tpu.iota {dimensions = array<i32: 0>} : vector<16x1xi32>
    %39 = vector.broadcast %37 : i32 to vector<16x1xi32>
    %40 = arith.addi %39, %38 : vector<16x1xi32>
    %c37_i32 = arith.constant 37 : i32
    %41 = vector.broadcast %c37_i32 : i32 to vector<16x1xi32>
    %42 = arith.cmpi slt, %40, %41 : vector<16x1xi32>
    %cst_15 = arith.constant 0.000000e+00 : f32
    %43 = vector.broadcast %cst_15 : f32 to vector<16x1xf32>
    %44 = arith.select %42, %36, %43 : vector<16x1xi1>, vector<16x1xf32>
    %45 = vector.shape_cast %44 : vector<16x1xf32> to vector<1x16x1xf32>
    %cst_16 = arith.constant dense<0.000000e+00> : vector<1xf32>
    %46 = vector.multi_reduction <add>, %45, %cst_16 [1, 2] : vector<1x16x1xf32> to vector<1xf32>
    %47 = vector.shape_cast %46 : vector<1xf32> to vector<1x1x1xf32>
    %48 = vector.extract %47[0, 0, 0] : f32 from vector<1x1x1xf32>
    %49 = vector.broadcast %48 : f32 to vector<1x8x128xf32>
    %c0_17 = arith.constant 0 : index
    %c0_18 = arith.constant 0 : index
    %c0_19 = arith.constant 0 : index
    %50 = vector.load %arg4[%c0_17, %c0_18, %c0_19] : memref<1x8x128xf32, #tpu.memory_space<vmem>>, vector<1x8x128xf32>
    tpu.vector_store %arg4[%c0_17, %c0_18, %c0_19], %49 {strides = array<i32>} : memref<1x8x128xf32, #tpu.memory_space<vmem>>, vector<1x8x128xf32>,
    return
  }
  func.func @transform_0(%arg0: i32) -> (i32, i32) {
    %c0_i32 = arith.constant 0 : i32
    %c0_i32_0 = arith.constant 0 : i32
    return %arg0, %c0_i32 : i32, i32
  }
  func.func @transform_1(%arg0: i32) -> (i32, i32) {
    %c0_i32 = arith.constant 0 : i32
    %c0_i32_0 = arith.constant 0 : i32
    return %arg0, %c0_i32 : i32, i32
  }
  func.func @transform_2(%arg0: i32) -> (i32, i32) {
    %c0_i32 = arith.constant 0 : i32
    %c0_i32_0 = arith.constant 0 : i32
    return %arg0, %c0_i32 : i32, i32
  }
  func.func @transform_3(%arg0: i32) -> (i32, i32, i32) {
    %c0_i32 = arith.constant 0 : i32
    %c0_i32_0 = arith.constant 0 : i32
    %c0_i32_1 = arith.constant 0 : i32
    return %arg0, %c0_i32, %c0_i32_0 : i32, i32, i32
  }
}

</mosaic_0001>

<bundles_post_ra>
// kernel: tpu_custom_call.1
= control target key start
LH: loop header
LB: loop body
LE: loop exit
PB: predicated region body
PF: predicated region fallthrough
CT: control target
= control target key end

     0   :  { %8 = vsyncpa [#allocation3], 0  ;;  %s719_s0 = inlined_call_operand.vmem [shape: f32[37,24], index: 0, kind: input, shape index: {}]   ;;  %s720_s1 = inlined_call_operand.vmem [shape: s32[37,1], index: 1, kind: input, shape index: {}]   ;;  %s721_s2 = inlined_call_operand.vmem [shape: f32[37,1], index: 2, kind: input, shape index: {}]   ;;  %s722_s3 = inlined_call_operand.hbm [shape: f32[3,8,128], index: 3, kind: output, shape index: {}]  }
   0x1   :  { %10 = vsyncpa [#allocation3 + $0x1], 0  ;;  %s619_s12 = smov 0   ;;  %s621_s13 = smov 0  }
   0x2   :  { %s623_s14 = smov 0   ;;  %s625_s15 = smov 0  }
   0x3 LB: > { %s640_s16 = sadd.s32 4294967295, %s596_s15   ;;  %s467_s17 = sadd.s32 4294967294, %s596_s15   ;;  %s596_s15 = sphi %s625_s15, %s728_s15   ;;  %s592_s14 = sphi %s623_s14, %s727_s14   ;;  %s588_s13 = sphi %s621_s13, %s726_s13   ;;  %s584_s12 = sphi %s619_s12, %s725_s12  }
   0x4   : > { %s644_s18 = sadd.s32 1, %s596_s15   ;;  %s101_s19 = sadd.s32 1, %s592_s14 }
   0x5   : > { %s98_s20 = ssub.s32 %s596_s15, %s644_s18  ;;  %p111_p0 = scmp.ne.s32.totalorder %s592_s14, %s588_s13 }
   0x6   : > { %p99_p1 = scmp.eq.s32.totalorder %s98_s20, 0  ;;  %p112_p2 = scmp.eq.s32.totalorder %s640_s16, 2 }
   0x7   : > { %p117_p3 = scmp.ne.s32.totalorder %s588_s13, %s584_s12  ;;  %p118_p4 = scmp.eq.s32.totalorder %s467_s17, 2 }
   0x8   : > { %s655_s21 = scalar_select %p99_p1, %s592_s14, %s101_s19  }
   0x9   : > { %p657_p5 = por %p112_p2, %p111_p0  ;;  %p661_p6 = por %p118_p4, %p117_p3 }
   0xa   : > { %p470_p7 = scmp.ge.s32.totalorder %s596_s15, 1  ;;  %p187_p8 = scmp.lt.s32.totalorder %s596_s15, 4 }
   0xc   : > { %p188_p9 = pnand %p470_p7, %p187_p8 }
   0xd   : > { %s472_s24 = sshll.u32 (!%p188_p9), %s640_s16, 1  ;;  %s478_s8 = sshll.u32 (!%p188_p9), %s640_s16, 4 }
   0xe   : > { %191 = sbr.rel (%p188_p9) target bundleno = 472 (0x1d8), region = 32  ;;  %p238_p10 = scmp.lt.s32.totalorder (!%p188_p9), %s472_s24, 4 }
   0xf   : > { %s230_s9 = sand.u32 (!%p188_p9), 1, %s588_s13   ;;  %s480_s11 = sshll.u32 (!%p188_p9), %s640_s16, 3 }
  0x10   : > { %s471_s10 = sshll.u32 (!%p188_p9), %s230_s9, 3  ;;  %s379_s20 = scalar_lea.hbm (!%p188_p9), %s722_s3, %s480_s11 }
  0x11   : > { %s383_s26 = sshll.u32 (!%p188_p9), %s379_s20, 4  ;;  %s554_s5 = scalar_lea.hbm (!%p188_p9), %s722_s3, 24  ;;  %s384_s26 = int_to_ptr.hbm [resolvable:$true] %s383_s26 }
  0x12   : > { %s548_s29 = sshra.s32 (!%p188_p9), %s384_s26, 4  ;;  %s549_s29 = int_to_ptr.hbm [resolvable:$true] %s548_s29 }
  0x13   : > { %v598_v0 = vmov 0   ;;  %s730_s24 = smov (!%p238_p10, %s472_s24), 4  ;;  %v281_v3 = vlaneseq  ;;  %vm295_vm0 = vcmask 195584   ;;  %v346_v45 = vstv %s478_s8  ;;  %s550_s30 = scalar_lea.hbm %s549_s29, 8 }
  0x14   : > { %525 = vset.pattern.permute.xlu0 %v598_v0  ;;  %s668_s25 = sshll.u32 %s730_s24, 3  ;;  %vm353_vm7 = vcmask 7168   ;;  %s232_s24 = scalar_lea.vmem [#allocation2], %s471_s10 }
  0x15   : > { %s255_s28 = scalar_lea.vmem %s720_s1, %s668_s25  ;;  %s241_s4 = scalar_lea.vmem %s719_s0, %s668_s25  ;;  %v282_v4 = vand.u32 127, %v281_v3  ;;  %v344_v41 = vshrl.u32 %v281_v3, 7 }
  0x16   : > { %v277_v1 = vld [vmem:[%s255_s28] sm:$0xff]  ;;  %v278_v2 = vld [vmem:[%s255_s28 + $0x8] sm:$0xff]  ;;  %s269_s7 = scalar_lea.vmem %s721_s2, %s668_s25  ;;  %s381_s25 = sshll.u32 %s232_s24, 4  ;;  %s382_s25 = int_to_ptr.vmem [resolvable:$true] %s381_s25 }
  0x17   : > { %284 = vperm.xlu0 %525, %v277_v1   ;;  %v275_v5 = vld [vmem:[%s241_s4] sm:$0xff]  ;;  %v276_v11 = vld [vmem:[%s241_s4 + $0x8] sm:$0xff]  ;;  %v345_v47 = vadd.s32 8, %v344_v41  ;;  %v347_v50 = vadd.s32 %v346_v45, %v344_v41  ;;  %s369_s28 = scalar_lea.sflag [#allocation3], %s230_s9  ;;  %p551_p11 = scmp.ne.s32.totalorder %s549_s29, %s550_s30 }
  0x18   : > { %v279_v21 = vld [vmem:[%s269_s7] sm:$0xff]  ;;  %v280_v33 = vld [vmem:[%s269_s7 + $0x8] sm:$0xff]  ;;  %p555_p0 = scmp.lt.s32.totalorder %s549_s29, %s722_s3  ;;  %p556_p1 = scmp.lt.s32.totalorder %s554_s5, %s550_s30 }
  0x19   : > { %v320_v23 = vsub.f32 1.0, %v279_v21  ;;  %v310_v30 = vsub.f32 0.0, %v279_v21  ;;  %v321_v38 = vsub.f32 1.0, %v280_v33  ;;  %v311_v43 = vsub.f32 0.0, %v280_v33  ;;  %p552_p12 = pnand %p551_p11, %p657_p5 }
  0x1a   : > { %v348_v54 = vadd.s32 %v346_v45, %v345_v47  ;;  %vm349_vm5 = vcmp.lt.s32.totalorder %v347_v50, 37  ;;  %p557_p2 = por %p556_p1, %p555_p0 }
  0x1b   : > { %v322_v29 = vsub.f32 0.0, %v320_v23  ;;  %v323_v42 = vsub.f32 0.0, %v321_v38  ;;  %p553_p13 = pneg %p552_p12 }
  0x1c   : > { %vm350_vm6 = vcmp.lt.s32.totalorder %v348_v54, 37 }
  0x1d   : > { %p558_p3 = pnand %p557_p2, %p553_p13 }
  0x1f   : > { %287 = vperm.xlu0 %525, %v278_v2  }
  0x89   : > { %v285_v6 = vpop.permute.xlu0 %284 }
  0x8a   : > { %vm289_vm1 = vcmp.le.s32.totalorder %v282_v4, %v285_v6  ;;  %vm291_vm2 = vcmp.eq.s32.totalorder %v282_v4, %v285_v6 }
  0x8b   : > { %v302_v7 = vsel %vm289_vm1, %v275_v5, 0.0  ;;  %v293_v8 = vsel %vm291_vm2, %v275_v5, 0.0 }
  0x8c   : > { %v304_v9 = vsel %vm295_vm0, %v302_v7, 0.0  ;;  %v296_v10 = vsel %vm295_vm0, %v293_v8, 0.0 }
  0x8d   : > { %305 = vadd.xlane.f32.xlu1 %v304_v9  ;;  %297 = vadd.xlane.f32.xlu2 %v296_v10 }
  0x91   : > { %v288_v12 = vpop.permute.xlu0 %287 }
  0x92   : > { %vm290_vm3 = vcmp.le.s32.totalorder %v282_v4, %v288_v12  ;;  %vm292_vm4 = vcmp.eq.s32.totalorder %v282_v4, %v288_v12 }
  0x93   : > { %v303_v13 = vsel %vm290_vm3, %v276_v11, 0.0  ;;  %v294_v14 = vsel %vm292_vm4, %v276_v11, 0.0 }
  0x94   : > { %v307_v15 = vsel %vm295_vm0, %v303_v13, 0.0  ;;  %v299_v16 = vsel %vm295_vm0, %v294_v14, 0.0 }
  0x95   : > { %308 = vadd.xlane.f32.xlu1 %v307_v15  ;;  %300 = vadd.xlane.f32.xlu2 %v299_v16 }
 0x100   : > { %v306_v17 = vpop.xlane.xlu1 %305  ;;  %v298_v18 = vpop.xlane.xlu2 %297 }
 0x101   : > { %v324_v19 = vsub.f32 1.0, %v306_v17  ;;  %v312_v20 = vmax.f32 %v298_v18, 1e-07 }
 0x103   : > { %v326_v22 = vmax.f32 %v324_v19, 1e-07  ;;  %526 = vlog2.f32 %v312_v20 }
 0x105   : > { %528 = vlog2.f32 %v326_v22 }
 0x108   : > { %v309_v24 = vpop.xlane.xlu1 %308  ;;  %v301_v25 = vpop.xlane.xlu2 %300 }
 0x109   : > { %v527_v26 = vpop.eup %526  ;;  %v325_v27 = vsub.f32 1.0, %v309_v24  ;;  %v313_v28 = vmax.f32 %v301_v25, 1e-07 }
 0x10a   : > { %v315_v31 = vmul.f32 0.6931472, %v527_v26 }
 0x10b   : > { %v529_v32 = vpop.eup %528  ;;  %v327_v34 = vmax.f32 %v325_v27, 1e-07  ;;  %530 = vlog2.f32 %v313_v28 }
 0x10c   : > { %v329_v35 = vmul.f32 0.6931472, %v529_v32  ;;  %v318_v37 = vmul.f32 %v315_v31, %v310_v30 }
 0x10d   : > { %532 = vlog2.f32 %v327_v34 }
 0x10e   : > { %v332_v36 = vmul.f32 %v329_v35, %v322_v29  ;;  %v338_v51 = vmul.f32 0.3, %v318_v37 }
 0x110   : > { %v334_v39 = vadd.f32 %v332_v36, %v318_v37 }
 0x111   : > { %v531_v40 = vpop.eup %530 }
 0x112   : > { %v317_v44 = vmul.f32 0.6931472, %v531_v40  ;;  %v336_v48 = vmul.f32 0.7, %v334_v39 }
 0x113   : > { %v533_v46 = vpop.eup %532 }
 0x114   : > { %v331_v49 = vmul.f32 0.6931472, %v533_v46  ;;  %v319_v53 = vmul.f32 %v317_v44, %v311_v43  ;;  %v340_v56 = vadd.f32 %v338_v51, %v336_v48 }
 0x116   : > { %v333_v52 = vmul.f32 %v331_v49, %v323_v42  ;;  %v339_v58 = vmul.f32 0.3, %v319_v53  ;;  %v351_v60 = vsel %vm349_vm5, %v340_v56, 0.0 }
 0x117   : > { %v354_v62 = vsel %vm353_vm7, %v351_v60, 0.0 }
 0x118   : > { %v335_v55 = vadd.f32 %v333_v52, %v319_v53 }
 0x11a   : > { %v337_v57 = vmul.f32 0.7, %v335_v55 }
 0x11c   : > { %v341_v59 = vadd.f32 %v339_v58, %v337_v57 }
 0x11e   : > { %v352_v61 = vsel %vm350_vm6, %v341_v59, 0.0 }
 0x11f   : > { %v355_v63 = vsel %vm353_vm7, %v352_v61, 0.0 }
 0x120   : > { %v356_v0 = vadd.f32 %v355_v63, %v354_v62 }
 0x122   : > { %357 = vadd.xlane.f32.xlu0 %v356_v0 }
 0x195   : > { %v358_v1 = vpop.xlane.xlu0 %357 }
 0x196   : > { %v359_v2 = vrot.slane %v358_v1, 4 }
 0x198   : > { %v360_v3 = vadd.f32 %v359_v2, %v358_v1 }
 0x19a   : > { %v361_v4 = vrot.slane %v360_v3, 2 }
 0x19c   : > { %v362_v5 = vadd.f32 %v361_v4, %v360_v3 }
 0x19e   : > { %v363_v6 = vrot.slane %v362_v5, 1 }
 0x1a0   : > { %v364_v7 = vadd.f32 %v363_v6, %v362_v5 }
 0x1a2   : > { %483 = vpush %v364_v7 }
 0x1d3   : > { %s484_s27 = spop %483 }
 0x1d4   : > { %v366_v8 = vstv %s484_s27 }
 0x1d5   : > { %367 = vst [vmem:[%s232_s24] sm:$0xff] %v366_v8 }
 0x1d6   : > { %561 = shalt.err (!%p558_p3)
}
 0x1d7   : > { %485 = dma.vmem_to_hbm [thread:$0]  (%p657_p5), %s382_s25, 128, %s384_s26, %s369_s28  }
 0x1d8 PF: > { %p491_p4 = scmp.ge.s32.totalorder %s596_s15, 2  ;;  %s395_s8 = sand.u32 1, %s584_s12  }
 0x1d9   : > { %s396_s9 = scalar_lea.sflag [#allocation3], %s395_s8 }
 0x1da   : > { %p488_p7 = pnand %p491_p4, %p661_p6 }
 0x1dc   : > { %p489_p8 = pneg %p488_p7 }
 0x1de   : > { %579 = dma.done.wait (%p489_p8), %s396_s9, 128  }
 0x1df   : > { %581 = vsyncadd (%p489_p8), %s396_s9, 4294967168  ;;  %p13_p9 = scmp.ge.s32.totalorder %s644_s18, 5   ;;  %s725_s12 = smov %s588_s13 }
 0x1e0   : > { %s726_s13 = smov %s592_s14  ;;  %s727_s14 = smov %s655_s21 }
 0x1e1   : > { %s728_s15 = smov %s644_s18  ;;  %15 = sbr.rel (!%p13_p9) target bundleno = 3 (0x3), region = 73 }
 0x1e6   :  { %402 = vsyncpa [#allocation3], 1 }
 0x1e7   :  { %404 = vsyncpa [#allocation3 + $0x1], 1 }

</bundles_post_ra>
